<compile_context>
chip_gen: v5e
topology: v5e:2x2
jax: 0.10.0
libtpu: 0.0.40
codegen_flags: <defaults>
</compile_context>

<pallas_src>
import functools

import jax
import jax.numpy as jnp
from jax import lax
from jax.experimental import pallas as pl
from jax.experimental.pallas import tpu as pltpu

_EPS = 1e-5


def _attn_tx_kernel(x_ref, w_ref, b_ref, gamma_ref, beta_ref, p_ref, o_ref,
                    a_scr):
    # x_ref : (k, vbs, D_in)   rows for k ghost batches
    # w_ref : (D_in, D_out)    fc weight (already transposed to (in, out))
    # b_ref, gamma_ref, beta_ref : (1, D_out)
    # p_ref : (k, vbs, D_out)  priors
    # o_ref : (k, vbs, D_out)  mask output
    # a_scr : (k, vbs, D_out)  f32 scratch holding the fc output
    a = jnp.einsum("kvd,dc->kvc", x_ref[...], w_ref[...],
                   preferred_element_type=jnp.float32)
    a_scr[...] = a + b_ref[...].astype(jnp.float32)

    # Per-ghost-batch (axis=1) training-mode batch stats, biased variance.
    mean = jnp.mean(a_scr[...], axis=1, keepdims=True)            # (k, 1, C)
    centered = a_scr[...] - mean
    var = jnp.mean(centered * centered, axis=1, keepdims=True)    # (k, 1, C)
    inv_std = lax.rsqrt(var + _EPS)

    # Fused affine: 2 full-tile VPU ops instead of 4.
    scale = inv_std * gamma_ref[...].astype(jnp.float32)          # (k, 1, C)
    shift = beta_ref[...].astype(jnp.float32) - mean * scale      # (k, 1, C)

    y = a_scr[...] * scale + shift                                 # GBN output
    z = y * p_ref[...].astype(jnp.float32)
    mask = 1.0 / (1.0 + jnp.exp(-z))                               # sigmoid
    o_ref[...] = mask.astype(o_ref.dtype)


def _pick_chunks_per_step(n_chunks, chunk_rows, d_in, d_out,
                          x_bytes, p_bytes, o_bytes,
                          target_rows=1024,
                          vmem_budget_bytes=32 * 1024 * 1024):
    """Pick how many ghost batches (k) to fuse into one grid step."""
    def step_bytes(k):
        rows = k * chunk_rows
        b = 2 * rows * d_in * x_bytes       # x block, double buffered
        b += 2 * rows * d_out * p_bytes     # priors block
        b += 2 * rows * d_out * o_bytes     # output block
        b += rows * d_out * 4               # f32 scratch (single buffer)
        b += 2 * d_in * d_out * 4 + 6 * d_out * 4   # weights + small vectors
        return b

    divisors = [k for k in range(1, n_chunks + 1) if n_chunks % k == 0]
    feasible = [k for k in divisors
                if step_bytes(k) <= vmem_budget_bytes
                and (k == 1 or k * chunk_rows <= target_rows)]
    if not feasible:
        feasible = [1]
    # Prefer leaving >= 2 grid steps (v7x has 2 TensorCores), ideally even.
    multi = [k for k in feasible if n_chunks // k >= 2]
    pool = multi if multi else feasible
    even = [k for k in pool if (n_chunks // k) % 2 == 0]
    pool = even if even else pool
    return max(pool)


@functools.partial(jax.jit, static_argnames=("vbs",))
def attention_transformer_forward(x, priors, weight, bias, gamma, beta, *,
                                  vbs=128):
    """AttentionTransformer forward.

    x: (B, D_in); priors: (B, D_out); weight: (D_in, D_out) (torch Linear
    weight transposed); bias/gamma/beta: (D_out,). Returns mask: (B, D_out).
    """
    B, D_in = x.shape
    D_out = weight.shape[1]
    n_chunks = max(1, B // vbs)
    # TODO(synk): torch.chunk produces uneven chunks when B % n_chunks != 0;
    # this kernel assumes the usual equal-sized ghost batches.
    assert B % n_chunks == 0, "GBN kernel assumes equal-sized ghost batches"
    chunk = B // n_chunks

    k = _pick_chunks_per_step(
        n_chunks, chunk, D_in, D_out,
        x_bytes=x.dtype.itemsize,
        p_bytes=priors.dtype.itemsize,
        o_bytes=x.dtype.itemsize)
    grid = (n_chunks // k,)

    x3 = x.reshape(n_chunks, chunk, D_in)
    p3 = priors.reshape(n_chunks, chunk, D_out)
    b2 = bias.reshape(1, D_out).astype(jnp.float32)
    g2 = gamma.reshape(1, D_out).astype(jnp.float32)
    be2 = beta.reshape(1, D_out).astype(jnp.float32)

    out3 = pl.pallas_call(
        _attn_tx_kernel,
        out_shape=jax.ShapeDtypeStruct((n_chunks, chunk, D_out), x.dtype),
        grid_spec=pltpu.PrefetchScalarGridSpec(
            num_scalar_prefetch=0,
            grid=grid,
            in_specs=[
                pl.BlockSpec((k, chunk, D_in), lambda i: (i, 0, 0)),   # x
                pl.BlockSpec((D_in, D_out), lambda i: (0, 0)),         # W
                pl.BlockSpec((1, D_out), lambda i: (0, 0)),            # bias
                pl.BlockSpec((1, D_out), lambda i: (0, 0)),            # gamma
                pl.BlockSpec((1, D_out), lambda i: (0, 0)),            # beta
                pl.BlockSpec((k, chunk, D_out), lambda i: (i, 0, 0)),  # priors
            ],
            out_specs=pl.BlockSpec((k, chunk, D_out), lambda i: (i, 0, 0)),
            scratch_shapes=[pltpu.VMEM((k, chunk, D_out), jnp.float32)],
        ),
        compiler_params=pltpu.CompilerParams(
            dimension_semantics=("parallel",),
            vmem_limit_bytes=48 * 1024 * 1024,
        ),
    )(x3, weight, b2, g2, be2, p3)

    return out3.reshape(B, D_out)


if __name__ == "__main__":
    key = jax.random.PRNGKey(0)
    B, D_in, D_out = 16, 32, 32   # small demo shapes
    vbs = 8                        # -> 2 ghost batches of 8 rows
    # relax ('r' buffer) only affects the discarded priors update, not mask.

    kx, kw, kb, kp = jax.random.split(key, 4)
    x = jax.random.normal(kx, (B, D_in), dtype=jnp.float32)
    weight = jax.random.normal(kw, (D_in, D_out), dtype=jnp.float32) * 0.1
    bias = jax.random.normal(kb, (D_out,), dtype=jnp.float32) * 0.1
    gamma = jnp.ones((D_out,), dtype=jnp.float32)   # BatchNorm1d default affine
    beta = jnp.zeros((D_out,), dtype=jnp.float32)
    priors = jax.random.uniform(kp, (B, D_out), dtype=jnp.float32)

    out = attention_transformer_forward(x, priors, weight, bias, gamma, beta,
                                        vbs=vbs)
    jax.block_until_ready(out)

    # Pure-JAX reference of the same math.
    def ref(x, priors, w, b, gamma, beta, vbs):
        a = jnp.dot(x, w, precision=lax.Precision.HIGHEST) + b
        n = max(1, x.shape[0] // vbs)
        outs = []
        for c in jnp.split(a, n, axis=0):
            m = jnp.mean(c, axis=0, keepdims=True)
            v = jnp.mean((c - m) ** 2, axis=0, keepdims=True)
            outs.append((c - m) / jnp.sqrt(v + _EPS) * gamma + beta)
        a = jnp.concatenate(outs, axis=0)
        return 1.0 / (1.0 + jnp.exp(-(a * priors)))

    expected = ref(x, priors, weight, bias, gamma, beta, vbs)
    assert jnp.allclose(out, expected, atol=1e-4, rtol=1e-4), float(
        jnp.max(jnp.abs(out - expected)))

    print("KERNEL_OK")
</pallas_src>

<mosaic_0001>
module attributes {stable_mosaic.version = 11 : i64} {
  func.func @_attn_tx_kernel(%arg0: i32, %arg1: memref<1x8x32xf32, #tpu.memory_space<vmem>>, %arg2: memref<32x32xf32, #tpu.memory_space<vmem>>, %arg3: memref<1x32xf32, #tpu.memory_space<vmem>>, %arg4: memref<1x32xf32, #tpu.memory_space<vmem>>, %arg5: memref<1x32xf32, #tpu.memory_space<vmem>>, %arg6: memref<1x8x32xf32, #tpu.memory_space<vmem>>, %arg7: memref<1x8x32xf32, #tpu.memory_space<vmem>>, %arg8: memref<1x8x32xf32, #tpu.memory_space<vmem>>) attributes {dimension_semantics = [#tpu.dimension_semantics<parallel>], iteration_bounds = array<i64: 2>, scalar_prefetch = 0 : i64, scratch_operands = 1 : i64, tpu.core_type = #tpu.core_type<tc>, window_params = [{transform_indices = @transform_0, window_bounds = array<i64: 1, 8, 32>}, {pipeline_mode = #tpu.pipeline_mode<synchronous>, transform_indices = @transform_1, window_bounds = array<i64: 32, 32>}, {pipeline_mode = #tpu.pipeline_mode<synchronous>, transform_indices = @transform_2, window_bounds = array<i64: 1, 32>}, {pipeline_mode = #tpu.pipeline_mode<synchronous>, transform_indices = @transform_3, window_bounds = array<i64: 1, 32>}, {pipeline_mode = #tpu.pipeline_mode<synchronous>, transform_indices = @transform_4, window_bounds = array<i64: 1, 32>}, {transform_indices = @transform_5, window_bounds = array<i64: 1, 8, 32>}, {transform_indices = @transform_6, window_bounds = array<i64: 1, 8, 32>}]} {
    %c0 = arith.constant 0 : index
    %c0_0 = arith.constant 0 : index
    %c0_1 = arith.constant 0 : index
    %0 = vector.load %arg1[%c0, %c0_0, %c0_1] : memref<1x8x32xf32, #tpu.memory_space<vmem>>, vector<1x8x32xf32>
    %c0_2 = arith.constant 0 : index
    %c0_3 = arith.constant 0 : index
    %1 = vector.load %arg2[%c0_2, %c0_3] : memref<32x32xf32, #tpu.memory_space<vmem>>, vector<32x32xf32>
    "tpu.trace_start"() <{level = 10 : i32, message = "kvd,dc->kvc"}> : () -> ()
    %cst = arith.constant dense<0.000000e+00> : vector<1x8x32xf32>
    %2 = tpu.matmul %0, %1, %cst {dimension_numbers = #tpu.dot_dimension_numbers<[2], [0], [0, 1], [1], [0, 0, 0, 1, 1, 1], [], []>} : vector<1x8x32xf32>, vector<32x32xf32>, vector<1x8x32xf32> -> vector<1x8x32xf32>
    "tpu.trace_stop"() : () -> ()
    %c0_4 = arith.constant 0 : index
    %c0_5 = arith.constant 0 : index
    %3 = vector.load %arg3[%c0_4, %c0_5] : memref<1x32xf32, #tpu.memory_space<vmem>>, vector<1x32xf32>
    %4 = vector.shape_cast %3 : vector<1x32xf32> to vector<1x1x32xf32>
    %5 = vector.broadcast %4 : vector<1x1x32xf32> to vector<1x8x32xf32>
    %6 = arith.addf %2, %5 : vector<1x8x32xf32>
    %c0_6 = arith.constant 0 : index
    %c0_7 = arith.constant 0 : index
    %c0_8 = arith.constant 0 : index
    %7 = vector.load %arg8[%c0_6, %c0_7, %c0_8] : memref<1x8x32xf32, #tpu.memory_space<vmem>>, vector<1x8x32xf32>
    tpu.vector_store %arg8[%c0_6, %c0_7, %c0_8], %6 {strides = array<i32>} : memref<1x8x32xf32, #tpu.memory_space<vmem>>, vector<1x8x32xf32>,
    %c0_9 = arith.constant 0 : index
    %c0_10 = arith.constant 0 : index
    %c0_11 = arith.constant 0 : index
    %8 = vector.load %arg8[%c0_9, %c0_10, %c0_11] : memref<1x8x32xf32, #tpu.memory_space<vmem>>, vector<1x8x32xf32>
    %cst_12 = arith.constant dense<0.000000e+00> : vector<1x32xf32>
    %9 = vector.multi_reduction <add>, %8, %cst_12 [1] : vector<1x8x32xf32> to vector<1x32xf32>
    %10 = vector.shape_cast %9 : vector<1x32xf32> to vector<1x1x32xf32>
    %cst_13 = arith.constant 8.000000e+00 : f32
    %11 = vector.broadcast %cst_13 : f32 to vector<1x1x32xf32>
    %12 = arith.divf %10, %11 : vector<1x1x32xf32>
    %c0_14 = arith.constant 0 : index
    %c0_15 = arith.constant 0 : index
    %c0_16 = arith.constant 0 : index
    %13 = vector.load %arg8[%c0_14, %c0_15, %c0_16] : memref<1x8x32xf32, #tpu.memory_space<vmem>>, vector<1x8x32xf32>
    %14 = vector.broadcast %12 : vector<1x1x32xf32> to vector<1x8x32xf32>
    %15 = arith.subf %13, %14 : vector<1x8x32xf32>
    %16 = arith.mulf %15, %15 : vector<1x8x32xf32>
    %cst_17 = arith.constant dense<0.000000e+00> : vector<1x32xf32>
    %17 = vector.multi_reduction <add>, %16, %cst_17 [1] : vector<1x8x32xf32> to vector<1x32xf32>
    %18 = vector.shape_cast %17 : vector<1x32xf32> to vector<1x1x32xf32>
    %cst_18 = arith.constant 8.000000e+00 : f32
    %19 = vector.broadcast %cst_18 : f32 to vector<1x1x32xf32>
    %20 = arith.divf %18, %19 : vector<1x1x32xf32>
    %cst_19 = arith.constant 9.99999974E-6 : f32
    %21 = vector.broadcast %cst_19 : f32 to vector<1x1x32xf32>
    %22 = arith.addf %20, %21 : vector<1x1x32xf32>
    %23 = math.rsqrt %22 : vector<1x1x32xf32>
    %c0_20 = arith.constant 0 : index
    %c0_21 = arith.constant 0 : index
    %24 = vector.load %arg4[%c0_20, %c0_21] : memref<1x32xf32, #tpu.memory_space<vmem>>, vector<1x32xf32>
    %25 = vector.shape_cast %24 : vector<1x32xf32> to vector<1x1x32xf32>
    %26 = arith.mulf %23, %25 : vector<1x1x32xf32>
    %c0_22 = arith.constant 0 : index
    %c0_23 = arith.constant 0 : index
    %27 = vector.load %arg5[%c0_22, %c0_23] : memref<1x32xf32, #tpu.memory_space<vmem>>, vector<1x32xf32>
    %28 = arith.mulf %12, %26 : vector<1x1x32xf32>
    %29 = vector.shape_cast %27 : vector<1x32xf32> to vector<1x1x32xf32>
    %30 = arith.subf %29, %28 : vector<1x1x32xf32>
    %c0_24 = arith.constant 0 : index
    %c0_25 = arith.constant 0 : index
    %c0_26 = arith.constant 0 : index
    %31 = vector.load %arg8[%c0_24, %c0_25, %c0_26] : memref<1x8x32xf32, #tpu.memory_space<vmem>>, vector<1x8x32xf32>
    %32 = vector.broadcast %26 : vector<1x1x32xf32> to vector<1x8x32xf32>
    %33 = arith.mulf %31, %32 : vector<1x8x32xf32>
    %34 = vector.broadcast %30 : vector<1x1x32xf32> to vector<1x8x32xf32>
    %35 = arith.addf %33, %34 : vector<1x8x32xf32>
    %c0_27 = arith.constant 0 : index
    %c0_28 = arith.constant 0 : index
    %c0_29 = arith.constant 0 : index
    %36 = vector.load %arg6[%c0_27, %c0_28, %c0_29] : memref<1x8x32xf32, #tpu.memory_space<vmem>>, vector<1x8x32xf32>
    %37 = arith.mulf %35, %36 : vector<1x8x32xf32>
    %cst_30 = arith.constant 0.000000e+00 : f32
    %38 = vector.broadcast %cst_30 : f32 to vector<1x8x32xf32>
    %39 = arith.subf %38, %37 : vector<1x8x32xf32>
    %40 = math.exp %39 : vector<1x8x32xf32>
    %cst_31 = arith.constant 1.000000e+00 : f32
    %41 = vector.broadcast %cst_31 : f32 to vector<1x8x32xf32>
    %42 = arith.addf %41, %40 : vector<1x8x32xf32>
    %cst_32 = arith.constant 1.000000e+00 : f32
    %43 = vector.broadcast %cst_32 : f32 to vector<1x8x32xf32>
    %44 = arith.divf %43, %42 : vector<1x8x32xf32>
    %c0_33 = arith.constant 0 : index
    %c0_34 = arith.constant 0 : index
    %c0_35 = arith.constant 0 : index
    %45 = vector.load %arg7[%c0_33, %c0_34, %c0_35] : memref<1x8x32xf32, #tpu.memory_space<vmem>>, vector<1x8x32xf32>
    tpu.vector_store %arg7[%c0_33, %c0_34, %c0_35], %44 {strides = array<i32>} : memref<1x8x32xf32, #tpu.memory_space<vmem>>, vector<1x8x32xf32>,
    return
  }
  func.func @transform_0(%arg0: i32) -> (i32, i32, i32) {
    %c0_i32 = arith.constant 0 : i32
    %c0_i32_0 = arith.constant 0 : i32
    %c0_i32_1 = arith.constant 0 : i32
    return %arg0, %c0_i32, %c0_i32_0 : i32, i32, i32
  }
  func.func @transform_1(%arg0: i32) -> (i32, i32) {
    %c0_i32 = arith.constant 0 : i32
    %c0_i32_0 = arith.constant 0 : i32
    %c0_i32_1 = arith.constant 0 : i32
    return %c0_i32, %c0_i32_0 : i32, i32
  }
  func.func @transform_2(%arg0: i32) -> (i32, i32) {
    %c0_i32 = arith.constant 0 : i32
    %c0_i32_0 = arith.constant 0 : i32
    %c0_i32_1 = arith.constant 0 : i32
    return %c0_i32, %c0_i32_0 : i32, i32
  }
  func.func @transform_3(%arg0: i32) -> (i32, i32) {
    %c0_i32 = arith.constant 0 : i32
    %c0_i32_0 = arith.constant 0 : i32
    %c0_i32_1 = arith.constant 0 : i32
    return %c0_i32, %c0_i32_0 : i32, i32
  }
  func.func @transform_4(%arg0: i32) -> (i32, i32) {
    %c0_i32 = arith.constant 0 : i32
    %c0_i32_0 = arith.constant 0 : i32
    %c0_i32_1 = arith.constant 0 : i32
    return %c0_i32, %c0_i32_0 : i32, i32
  }
  func.func @transform_5(%arg0: i32) -> (i32, i32, i32) {
    %c0_i32 = arith.constant 0 : i32
    %c0_i32_0 = arith.constant 0 : i32
    %c0_i32_1 = arith.constant 0 : i32
    return %arg0, %c0_i32, %c0_i32_0 : i32, i32, i32
  }
  func.func @transform_6(%arg0: i32) -> (i32, i32, i32) {
    %c0_i32 = arith.constant 0 : i32
    %c0_i32_0 = arith.constant 0 : i32
    %c0_i32_1 = arith.constant 0 : i32
    return %arg0, %c0_i32, %c0_i32_0 : i32, i32, i32
  }
}

</mosaic_0001>

<bundles_post_ra>
// kernel: attention_transformer_forward.1
= control target key start
LH: loop header
LB: loop body
LE: loop exit
PB: predicated region body
PF: predicated region fallthrough
CT: control target
= control target key end

     0   :  { %s1040_s0 = inlined_call_operand.hbm [shape: f32[2,8,32], index: 0, kind: input, shape index: {}]   ;;  %s1041_s1 = inlined_call_operand.hbm [shape: f32[32,32], index: 1, kind: input, shape index: {}]   ;;  %s1042_s2 = inlined_call_operand.vmem [shape: f32[1,32], index: 2, kind: input, shape index: {}]   ;;  %s1043_s3 = inlined_call_operand.vmem [shape: f32[1,32], index: 3, kind: input, shape index: {}]   ;;  %s1044_s4 = inlined_call_operand.vmem [shape: f32[1,32], index: 4, kind: input, shape index: {}]   ;;  %s1045_s5 = inlined_call_operand.hbm [shape: f32[2,8,32], index: 5, kind: input, shape index: {}]   ;;  %s1046_s6 = inlined_call_operand.hbm [shape: f32[2,8,32], index: 6, kind: output, shape index: {}]  }
   0x1   :  { %1049 = sst [smem:[#allocation16_spill]] %s1040_s0 }
   0x2   :  { %1050 = sst [smem:[#allocation17_spill]] %s1041_s1 }
   0x3   :  { %11 = vsyncpa [#allocation4], 0 }
   0x4   :  { %13 = vsyncpa [#allocation4 + $0x1], 0 }
   0x5   :  { %14 = vsyncpa [#allocation7], 0 }
   0x6   :  { %15 = vsyncpa [#allocation5], 0 }
   0x7   :  { %17 = vsyncpa [#allocation5 + $0x1], 0  ;;  %s839_s21 = smov 0   ;;  %s841_s22 = smov 0  }
   0x8   :  { %s843_s23 = smov 0   ;;  %s845_s24 = smov 0  }
   0x9 LB: > { %1051 = sst [smem:[#allocation14_spill]] %s794_s23  ;;  %s860_s25 = sadd.s32 4294967295, %s798_s24   ;;  %s798_s24 = sphi %s845_s24, %s1068_s24   ;;  %s794_s23 = sphi %s843_s23, %s1065_s23   ;;  %s790_s22 = sphi %s841_s22, %s1067_s22   ;;  %s786_s21 = sphi %s839_s21, %s1066_s21  }
   0xa   : > { %s542_s26 = sadd.s32 4294967294, %s798_s24   ;;  %s864_s27 = sadd.s32 1, %s798_s24  }
   0xb   : > { %s30_s28 = sadd.s32 1, %s794_s23  ;;  %s27_s29 = ssub.s32 %s798_s24, %s864_s27 }
   0xc   : > { %p37_p0 = scmp.ne.s32.totalorder %s794_s23, %s790_s22  ;;  %p28_p1 = scmp.eq.s32.totalorder %s27_s29, 0 }
   0xd   : > { %p38_p2 = scmp.eq.s32.totalorder %s798_s24, 0  ;;  %p43_p3 = scmp.ne.s32.totalorder %s790_s22, %s786_s21 }
   0xe   : > { %p177_p4 = scmp.eq.s32.totalorder %s860_s25, 1  ;;  %p183_p6 = scmp.eq.s32.totalorder %s542_s26, 1 }
   0xf   : > { %s876_s30 = scalar_select %p28_p1, %s794_s23, %s30_s28  }
  0x10   : > { %p878_p5 = por %p177_p4, %p37_p0  ;;  %p882_p7 = por %p38_p2, %p37_p0 }
  0x11   : > { %1052 = sst [smem:[#allocation15_spill]] %s876_s30  ;;  %p890_p9 = por %p183_p6, %p43_p3 }
  0x12   : > { %p586_p10 = scmp.lt.s32.totalorder %s798_s24, 2  ;;  %s226_s10 = sand.u32 1, %s798_s24  }
  0x13   : > { %s228_s11 = sand.u32 1, %s794_s23   ;;  %s547_s13 = sshll.u32 %s798_s24, 3 }
  0x14   : > { %s897_s12 = sshll.u32 %s228_s11, 3  ;;  %s1056_s0 = sld [smem:[#allocation16_spill]] }
  0x15   : > { %s230_s18 = scalar_lea.vmem [#allocation3], %s897_s12  ;;  %p906_p11 = pnand %p586_p10, %p882_p7 }
  0x16   : > { %s238_s19 = sshll.u32 %s230_s18, 4  ;;  %p1048_p12 = scmp.eq.s32.totalorder %s860_s25, 0  ;;  %s239_s19 = int_to_ptr.vmem [resolvable:$true] %s238_s19 }
  0x17   : > { %p543_p13 = scmp.ge.s32.totalorder %s798_s24, 1  ;;  %s912_s26 = scalar_lea.sflag [#allocation4], %s226_s10 }
  0x18   : > { %p638_p1 = pneg %p906_p11 }
  0x1a   : > { %s234_s16 = scalar_lea.hbm %s1056_s0, %s547_s13  ;;  %s641_s14 = scalar_lea.hbm %s1056_s0, 16 }
  0x1b   : > { %s236_s17 = sshll.u32 %s234_s16, 4  ;;  %s237_s17 = int_to_ptr.hbm [resolvable:$true] %s236_s17 }
  0x1c   : > { %s634_s28 = sshra.s32 %s237_s17, 4  ;;  %s635_s28 = int_to_ptr.hbm [resolvable:$true] %s634_s28 }
  0x1d   : > { %s636_s29 = scalar_lea.hbm %s635_s28, 8  ;;  %p642_p6 = scmp.lt.s32.totalorder %s635_s28, %s1056_s0 }
  0x1e   : > { %p637_p0 = scmp.ne.s32.totalorder %s635_s28, %s636_s29  ;;  %p643_p7 = scmp.lt.s32.totalorder %s641_s14, %s636_s29 }
  0x20   : > { %p639_p2 = pnand %p638_p1, %p637_p0  ;;  %p644_p10 = por %p643_p7, %p642_p6 }
  0x22   : > { %p640_p4 = pneg %p639_p2 }
  0x24   : > { %p645_p8 = pnand %p644_p10, %p640_p4 }
  0x26   : > { %648 = shalt.err (!%p645_p8)
}
  0x27   : > { %577 = dma.hbm_to_vmem [thread:$0]  (!%p906_p11), %s237_s17, 128, %s239_s19, %s912_s26  }
  0x28   : > { %p933_p0 = por %p1048_p12, %p43_p3  ;;  %p190_p2 = scmp.lt.s32.totalorder %s798_s24, 3 }
  0x29   : > { %s1059_s1 = sld [smem:[#allocation17_spill]]  ;;  %s253_s14 = scalar_lea.hbm %s1045_s5, %s547_s13 }
  0x2a   : > { %p946_p8 = pnand %p543_p13, %p190_p2  ;;  %s800_s17 = smov [#allocation6]  }
  0x2b   : > { %s203_s19 = sshll.u32 %s800_s17, 4  ;;  %s255_s16 = sshll.u32 %s253_s14, 4  ;;  %s204_s19 = int_to_ptr.vmem [resolvable:$true] %s203_s19  ;;  %s256_s16 = int_to_ptr.hbm [resolvable:$true] %s255_s16 }
  0x2c   : > { %p570_p3 = pneg %p946_p8  ;;  %s249_s18 = scalar_lea.vmem [#allocation8], %s897_s12 }
  0x2d   : > { %s257_s28 = sshll.u32 %s249_s18, 4  ;;  %s801_s13 = smov 128   ;;  %s258_s28 = int_to_ptr.vmem [resolvable:$true] %s257_s28 }
  0x2e   : > { %p571_p4 = pnand %p570_p3, %p1048_p12  ;;  %s802_s8 = smov 8  }
  0x2f   : > { %s201_s29 = sshll.u32 %s1059_s1, 4  ;;  %s694_s11 = sshra.s32 %s256_s16, 4  ;;  %s202_s29 = int_to_ptr.hbm [resolvable:$true] %s201_s29  ;;  %s695_s11 = int_to_ptr.hbm [resolvable:$true] %s694_s11 }
  0x30   : > { %573 = dma.hbm_to_vmem [thread:$0]  (!%p571_p4), %s202_s29, 512, %s204_s19, [#allocation7], %s801_s13, %s801_s13, %s802_s8  }
  0x31   : > { %s696_s0 = scalar_lea.hbm %s695_s11, 8  ;;  %s701_s14 = scalar_lea.hbm %s1045_s5, 16 }
  0x32   : > { %p697_p13 = scmp.ne.s32.totalorder %s695_s11, %s696_s0  ;;  %p702_p10 = scmp.lt.s32.totalorder %s695_s11, %s1045_s5 }
  0x33   : > { %p703_p2 = scmp.lt.s32.totalorder %s701_s14, %s696_s0 }
  0x34   : > { %p699_p6 = pnand %p697_p13, %p638_p1 }
  0x35   : > { %p704_p3 = por %p703_p2, %p702_p10 }
  0x36   : > { %p700_p7 = pneg %p699_p6 }
  0x38   : > { %p705_p12 = pnand %p704_p3, %p700_p7 }
  0x3a   : > { %708 = shalt.err (!%p705_p12)
}
  0x3b   : > { %580 = dma.hbm_to_vmem [thread:$0]  (!%p906_p11), %s256_s16, 128, %s258_s28, %s912_s26  }
  0x3c   : > { %266 = sbr.rel (%p946_p8) target bundleno = 315 (0x13b), region = 44  ;;  %s268_s1 = sand.u32 (!%p946_p8), 1, %s860_s25  }
  0x3d   : > { %s270_s12 = sand.u32 (!%p946_p8), 1, %s790_s22   ;;  %s269_s0 = scalar_lea.sflag (!%p946_p8), [#allocation4], %s268_s1 }
  0x3e   : > { %s973_s23 = sshll.u32 (!%p946_p8), %s270_s12, 3 }
  0x3f   : > { %s272_s30 = scalar_lea.vmem (!%p946_p8), [#allocation3], %s973_s23 }
  0x41   : > { %769 = dma.done.wait (%p933_p0), %s269_s0, 128  }
  0x42   : > { %771 = vsyncadd (%p933_p0), %s269_s0, 4294967168  ;;  %p1061_p11 = scmp.eq.s32.totalorder %s860_s25, 0 }
  0x44   : > { %773 = dma.done.wait (%p1061_p11), [#allocation7], 512   ;;  %p1062_p12 = pmov %p1061_p11 }
  0x45   : > { %s287_s20 = scalar_lea.vmem [#allocation8], %s973_s23 }
  0x46   : > { %775 = vsyncadd (%p1062_p12), [#allocation7], 4294966784 }
  0x47   : > { %777 = dma.done.wait (%p933_p0), %s269_s0, 128  }
  0x48   : > { %779 = vsyncadd (%p933_p0), %s269_s0, 4294967168  ;;  %v326_v0 = vld [vmem:[#allocation6 + $0x18] sm:$0xff]  ;;  %v325_v1 = vld [vmem:[#allocation6 + $0x10] sm:$0xff]  ;;  %vm331_vm0 = vcmask 261120   ;;  %v803_v5 = vmov 8.0   ;;  %s557_s18 = sshll.u32 %s860_s25, 3 }
  0x49   : > { %347 = vmatpush.msra.mxu0 %v326_v0  ;;  %v324_v2 = vld [vmem:[#allocation6 + $0x8] sm:$0xff]  ;;  %v323_v3 = vld [vmem:[#allocation6] sm:$0xff]  ;;  %v322_v4 = vld [vmem:[%s272_s30] sm:$0xff]  ;;  %626 = vrcp.f32 %v803_v5  ;;  %s437_s8 = scalar_lea.hbm %s1046_s6, %s557_s18  ;;  %s321_s11 = scalar_lea.vmem [#allocation9], %s973_s23 }
  0x4a   : > { %v625_v6 = vld [vmem:[%s1042_s2] ss:$0 sm:$0xff]  ;;  %s439_s17 = sshll.u32 %s321_s11, 4  ;;  %s441_s14 = sshll.u32 %s437_s8, 4  ;;  %s440_s17 = int_to_ptr.vmem [resolvable:$true] %s439_s17  ;;  %s442_s14 = int_to_ptr.hbm [resolvable:$true] %s441_s14 }
  0x4b   : > { %348 = vmatpush.msra.mxu0 %v325_v1  ;;  %v393_v41 = vld [vmem:[%s1043_s3] sm:$0x1]  ;;  %s427_s25 = scalar_lea.sflag [#allocation5], %s270_s12  ;;  %s738_s1 = sshra.s32 %s442_s14, 4  ;;  %s739_s1 = int_to_ptr.hbm [resolvable:$true] %s738_s1 }
  0x4c   : > { %v395_v44 = vld [vmem:[%s1044_s4] sm:$0x1]  ;;  %s740_s0 = scalar_lea.hbm %s739_s1, 8  ;;  %p745_p4 = scmp.lt.s32.totalorder %s739_s1, %s1046_s6 }
  0x4d   : > { %349 = vmatpush.msra.mxu0 %v324_v2  ;;  %v404_v50 = vld [vmem:[%s287_s20] sm:$0xff]  ;;  %p741_p1 = scmp.ne.s32.totalorder %s739_s1, %s740_s0  ;;  %s744_s20 = scalar_lea.hbm %s1046_s6, 16 }
  0x4e   : > { %p746_p13 = scmp.lt.s32.totalorder %s744_s20, %s740_s0 }
  0x4f   : > { %350 = vmatpush.msra.mxu0 %v323_v3  ;;  %v627_v9 = vpop.eup %626  ;;  %p742_p0 = pnand %p741_p1, %p878_p5 }
  0x50   : > { %555 = vmatmul.msk.f32.vlgmr.msra.gmra.mxu0 %vm331_vm0, %v322_v4  ;;  %v365_v10 = vmul.f32 8.0, %v627_v9  ;;  %vm369_vm1 = vweird.f32 %v627_v9  ;;  %p747_p6 = por %p746_p13, %p745_p4 }
  0x51   : > { %p743_p8 = pneg %p742_p0 }
  0x52   : > { %v366_v11 = vsub.f32 1.0, %v365_v10 }
  0x53   : > { %p748_p7 = pnand %p747_p6, %p743_p8 }
  0x54   : > { %v367_v15 = vmul.f32 %v627_v9, %v366_v11 }
  0x56   : > { %v368_v18 = vadd.f32 %v627_v9, %v367_v15 }
  0x58   : > { %v370_v21 = vsel %vm369_vm1, %v627_v9, %v368_v18 }
  0xcd   : > { %v352_v7 = vpop.f32.mrf.mxu0 }
  0xce   : > { %v353_v8 = vadd.f32 %v625_v6, %v352_v7 }
  0xd0   : > { %355 = vst.msk [vmem:[#allocation2] sm:$0xff] %vm331_vm0, %v353_v8 }
  0xd7   : > { %v356_v12 = vld [vmem:[#allocation2] sm:$0xff] }
  0xd8   : > { %v357_v13 = vsel %vm331_vm0, %v356_v12, 0.0 }
  0xd9   : > { %v358_v14 = vrot.slane %v357_v13, 4 }
  0xdb   : > { %v359_v16 = vadd.f32 %v358_v14, %v357_v13 }
  0xdd   : > { %v360_v17 = vrot.slane %v359_v16, 2 }
  0xdf   : > { %v361_v19 = vadd.f32 %v360_v17, %v359_v16 }
  0xe1   : > { %v362_v20 = vrot.slane %v361_v19, 1 }
  0xe3   : > { %v363_v22 = vadd.f32 %v362_v20, %v361_v19 }
  0xe5   : > { %v371_v23 = vmul.f32 %v370_v21, %v363_v22 }
  0xe7   : > { %v372_v24 = vsub.f32 %v356_v12, %v371_v23 }
  0xe9   : > { %v373_v25 = vmul.f32 %v372_v24, %v372_v24 }
  0xeb   : > { %v374_v26 = vsel %vm331_vm0, %v373_v25, 0.0 }
  0xec   : > { %v375_v27 = vrot.slane %v374_v26, 4 }
  0xee   : > { %v376_v28 = vadd.f32 %v375_v27, %v374_v26 }
  0xf0   : > { %v377_v29 = vrot.slane %v376_v28, 2 }
  0xf2   : > { %v378_v30 = vadd.f32 %v377_v29, %v376_v28 }
  0xf4   : > { %v379_v31 = vrot.slane %v378_v30, 1 }
  0xf6   : > { %v380_v32 = vadd.f32 %v379_v31, %v378_v30 }
  0xf8   : > { %v381_v33 = vmul.f32 %v380_v32, %v370_v21 }
  0xfa   : > { %v382_v34 = vadd.f32 1e-05, %v381_v33 }
  0xfc   : > { %628 = vrsqrt.f32 %v382_v34  ;;  %vm389_vm3 = vweird.f32 %v382_v34 }
 0x102   : > { %v629_v35 = vpop.eup %628 }
 0x103   : > { %v384_v36 = vmul.f32 %v629_v35, %v382_v34  ;;  %vm390_vm2 = vweird.f32 %v629_v35 }
 0x104   : > { %vm391_vm4 = vmor %vm389_vm3, %vm390_vm2 }
 0x105   : > { %v385_v37 = vmul.f32 %v629_v35, %v384_v36 }
 0x107   : > { %v386_v38 = vmul.f32 0.5, %v385_v37 }
 0x109   : > { %v387_v39 = vsub.f32 1.5, %v386_v38 }
 0x10b   : > { %v388_v40 = vmul.f32 %v629_v35, %v387_v39 }
 0x10d   : > { %v392_v42 = vsel %vm391_vm4, %v629_v35, %v388_v40 }
 0x10e   : > { %v394_v43 = vmul.f32 %v393_v41, %v392_v42 }
 0x110   : > { %v396_v45 = vmul.f32 %v394_v43, %v371_v23  ;;  %v398_v46 = vperm.slane %v394_v43, 0 }
 0x112   : > { %v397_v47 = vsub.f32 %v395_v44, %v396_v45  ;;  %v399_v48 = vmul.f32 %v398_v46, %v356_v12 }
 0x114   : > { %v401_v49 = vperm.slane %v397_v47, 0 }
 0x116   : > { %v403_v51 = vadd.f32 %v401_v49, %v399_v48 }
 0x118   : > { %v405_v52 = vmul.f32 %v404_v50, %v403_v51 }
 0x11a   : > { %v406_v53 = vsub.f32 0.0, %v405_v52 }
 0x11c   : > { %v407_v54 = vmul.f32 1.442695, %v406_v53 }
 0x11e   : > { %630 = vpow2.f32 %v407_v54 }
 0x124   : > { %v631_v55 = vpop.eup %630 }
 0x125   : > { %v409_v56 = vadd.f32 1.0, %v631_v55 }
 0x127   : > { %632 = vrcp.f32 %v409_v56  ;;  %v421_v60 = vand.u32 2147483648, %v409_v56  ;;  %v419_v62 = vand.u32 2147483647, %v409_v56  ;;  %vm415_vm6 = vweird.f32 %v409_v56 }
 0x129   : > { %v422_v0 = vor.u32 1.1754944e-38, %v421_v60  ;;  %vm420_vm8 = vcmp.eq.f32.partialorder %v419_v62, 8.507059e+37 }
 0x12d   : > { %v633_v57 = vpop.eup %632 }
 0x12e   : > { %v411_v58 = vmul.f32 %v633_v57, %v409_v56  ;;  %vm416_vm5 = vweird.f32 %v633_v57 }
 0x12f   : > { %vm417_vm7 = vmor %vm415_vm6, %vm416_vm5 }
 0x130   : > { %v412_v59 = vsub.f32 1.0, %v411_v58 }
 0x132   : > { %v413_v61 = vmul.f32 %v633_v57, %v412_v59 }
 0x134   : > { %v414_v63 = vadd.f32 %v633_v57, %v413_v61 }
 0x136   : > { %v418_v1 = vsel %vm417_vm7, %v633_v57, %v414_v63 }
 0x137   : > { %v423_v2 = vsel %vm420_vm8, %v422_v0, %v418_v1 }
 0x138   : > { %425 = vst.msk [vmem:[%s321_s11] sm:$0xff] %vm331_vm0, %v423_v2 }
 0x139   : > { %751 = shalt.err (!%p748_p7)
}
 0x13a   : > { %568 = dma.vmem_to_hbm [thread:$0]  (%p878_p5), %s440_s17, 128, %s442_s14, %s427_s25  }
 0x13b PF: > { %s453_s12 = sand.u32 1, %s786_s21   ;;  %p1063_p10 = scmp.ge.s32.totalorder %s798_s24, 2 }
 0x13c   : > { %s454_s10 = scalar_lea.sflag [#allocation5], %s453_s12 }
 0x13d   : > { %p582_p2 = pnand %p1063_p10, %p890_p9 }
 0x13f   : > { %p583_p3 = pneg %p582_p2 }
 0x141   : > { %781 = dma.done.wait (%p583_p3), %s454_s10, 128  }
 0x142   : > { %783 = vsyncadd (%p583_p3), %s454_s10, 4294967168  ;;  %s1064_s15 = sld [smem:[#allocation14_spill]]  ;;  %p20_p11 = scmp.ge.s32.totalorder %s864_s27, 4  }
 0x143   : > { %s1065_s23 = sld [smem:[#allocation15_spill]]  ;;  %s1066_s21 = smov %s790_s22 }
 0x144   : > { %s1068_s24 = smov %s864_s27  ;;  %22 = sbr.rel (!%p20_p11) target bundleno = 9 (0x9), region = 104 }
 0x148   : > { %s1067_s22 = smov %s1064_s15 }
 0x149   :  { %460 = vsyncpa [#allocation4], 1 }
 0x14a   :  { %462 = vsyncpa [#allocation4 + $0x1], 1 }
 0x14b   :  { %463 = vsyncpa [#allocation7], 1 }
 0x14c   :  { %464 = vsyncpa [#allocation5], 1 }
 0x14d   :  { %466 = vsyncpa [#allocation5 + $0x1], 1 }

</bundles_post_ra>
